<compile_context>
chip_gen: v7x
topology: tpu7x:2x2x1
jax: 0.10.0
libtpu: 0.0.40
codegen_flags: <defaults>
</compile_context>

<pallas_src>
import math

import jax
import jax.numpy as jnp
from jax import lax
from jax.experimental import pallas as pl
from jax.experimental.pallas import tpu as pltpu


def _round_up(x, m):
    return ((x + m - 1) // m) * m


def _vq_kernel(x_ref, e_ref, esqh_ref, ones_ref, q_ref, idx_ref, sse_ref):
    """One tile of rows: nearest-codeword lookup + per-row squared error.

    x_ref:    (T, D)           input rows (caller dtype), streamed / double-buffered
    e_ref:    (Kp, D)   f32    codebook, lane-padded, grid-resident
    esqh_ref: (1, Kp)   f32    0.5*||e_k||^2 (sentinel 1e30 on padded rows), resident
    ones_ref: (D, 1)    f32    ones column for the MXU row reduction, resident
    q_ref:    (T, D)           quantized rows (caller dtype)
    idx_ref:  (1, T//128, 128) int32 nearest-codeword indices (lane-dense)
    sse_ref:  (1, T//128, 128) f32   per-row sum of squared error (lane-dense)
    """
    x = x_ref[...].astype(jnp.float32)       # cast in vregs (free) vs an extra HBM pass
    e = e_ref[...]                           # (Kp, D)
    e_sq_half = esqh_ref[...]                # (1, Kp)

    # argmin_k ||x - e_k||^2 == argmin_k (0.5*||e_k||^2 - x.e_k); the ||x||^2 term
    # is constant per row and the positive 0.5 scale preserves the ordering.
    # TODO(synk): for large K*D cast the matmul operands to bf16 (3x fewer MXU
    # passes); kept f32 here so indices match the f32 reference bit-for-bit.
    xe = lax.dot_general(x, e, (((1,), (1,)), ((), ())),
                         preferred_element_type=jnp.float32)          # (T, Kp)
    dist = e_sq_half - xe                                             # (T, Kp)

    idx = jnp.argmin(dist, axis=1).astype(jnp.int32)                  # (T,)

    # Gather codewords via a one-hot matmul (MXU-friendly, no dynamic gather).
    k_iota = lax.broadcasted_iota(jnp.int32, dist.shape, 1)           # (T, Kp)
    onehot = (k_iota == idx[:, None]).astype(jnp.float32)             # (T, Kp)
    q = jnp.dot(onehot, e, preferred_element_type=jnp.float32)        # (T, D) exact codewords

    q_ref[...] = q.astype(q_ref.dtype)
    idx_ref[...] = idx.reshape(idx_ref.shape)

    # Per-row SSE: D-axis reduction done on the idle MXU (ones-column matmul)
    # instead of an XLU lane reduce.  Padded/garbage-row masking, the mean and
    # the (1 + commitment_cost) scaling happen in the wrapper.
    diff = q - x
    sse = jnp.dot(diff * diff, ones_ref[...],
                  preferred_element_type=jnp.float32)                 # (T, 1)
    sse_ref[...] = sse[:, 0].reshape(sse_ref.shape)


def _pick_tile_n(k_pad, d, in_bytes, out_bytes, *, budget=40 << 20,
                 max_tile=2048, min_tile=512):
    """Largest row tile whose working set fits a VMEM budget safe on v5e/v6e/v7x."""
    tile = max_tile
    while tile > min_tile:
        est = (2 * tile * d * (in_bytes + out_bytes)          # x / q pipeline buffers
               + 4 * tile * 4                                 # idx / sse blocks
               + 2 * (k_pad * d * 4 + k_pad * 4 + d * 4)      # resident operands
               + 4 * tile * k_pad * 4                         # (T, K) f32 temporaries
               + 3 * tile * d * 4)                            # f32 x / q / diff temps
        if est <= budget:
            break
        tile -= 512
    return max(tile, min_tile)


def quantizer_forward(inputs, embeddings, commitment_cost=0.25, tile_n=None):
    """JAX/Pallas forward pass of the PyTorch Quantizer (VQ-VAE) module.

    inputs:     float array (..., D)
    embeddings: float array (K, D)
    Returns (quantized with inputs' shape/dtype, encoding_indices (N,), loss scalar).
    """
    input_shape = inputs.shape
    K, D = embeddings.shape
    assert input_shape[-1] == D, f"Input dim {input_shape[-1]} != embedding dim {D}"

    N = math.prod(input_shape[:-1]) if len(input_shape) > 1 else 1
    flat = inputs.reshape(N, D)              # no dtype cast, no full-array pad

    # Codebook prep (tiny (K, D) arrays).  Lane-pad K to a multiple of 128 with
    # sentinel entries (zero codeword, huge ||e||^2) so the (T, K) argmin path
    # runs on full, unmasked vregs and padded entries never win.
    emb = embeddings.astype(jnp.float32)
    e_sq_half = 0.5 * jnp.sum(emb * emb, axis=1)                      # (K,)
    K_pad = _round_up(K, 128)
    if K_pad != K:
        emb = jnp.concatenate([emb, jnp.zeros((K_pad - K, D), jnp.float32)], 0)
        e_sq_half = jnp.concatenate(
            [e_sq_half, jnp.full((K_pad - K,), 1e30, jnp.float32)], 0)
    e_sq_half = e_sq_half[None, :]                                    # (1, K_pad)
    ones_col = jnp.ones((D, 1), jnp.float32)

    out_dtype = inputs.dtype
    in_bytes = jnp.dtype(inputs.dtype).itemsize
    out_bytes = jnp.dtype(out_dtype).itemsize
    if tile_n is None:
        tile_n = _pick_tile_n(K_pad, D, in_bytes, out_bytes)
    tile_n = max(_round_up(int(tile_n), 128), 128)

    # Balanced tiles (padding bounded by <128 rows per tile) and >=2 grid steps
    # whenever N >= 256 so the "parallel" N axis shards across both v7x cores.
    n_128 = _round_up(N, 128)
    num_tiles = max(pl.cdiv(n_128, tile_n), 2 if n_128 >= 256 else 1)
    tile = _round_up(pl.cdiv(n_128, num_tiles), 128)
    num_tiles = pl.cdiv(n_128, tile)
    rows = tile // 128

    # Only tiny inputs (N < 128) get an explicit (negligible) pad; otherwise the
    # ragged tail is handled by Pallas' clamped boundary blocks — no extra HBM pass.
    if N < tile:
        flat = jnp.pad(flat, ((0, tile - N), (0, 0)))
        n_rows_q = tile
    else:
        n_rows_q = N

    q, idx_out, sse_out = pl.pallas_call(
        _vq_kernel,
        grid=(num_tiles,),
        in_specs=[
            pl.BlockSpec((tile, D), lambda i: (i, 0)),        # x tile (double-buffered)
            pl.BlockSpec((K_pad, D), lambda i: (0, 0)),       # codebook, resident
            pl.BlockSpec((1, K_pad), lambda i: (0, 0)),       # 0.5*||e||^2, resident
            pl.BlockSpec((D, 1), lambda i: (0, 0)),           # ones column, resident
        ],
        out_specs=(
            pl.BlockSpec((tile, D), lambda i: (i, 0)),
            pl.BlockSpec((1, rows, 128), lambda i: (i, 0, 0)),
            pl.BlockSpec((1, rows, 128), lambda i: (i, 0, 0)),
        ),
        out_shape=(
            jax.ShapeDtypeStruct((n_rows_q, D), out_dtype),             # quantized
            jax.ShapeDtypeStruct((num_tiles, rows, 128), jnp.int32),    # indices
            jax.ShapeDtypeStruct((num_tiles, rows, 128), jnp.float32),  # per-row SSE
        ),
        compiler_params=pltpu.CompilerParams(
            dimension_semantics=("parallel",),       # N axis independent -> megacore
            vmem_limit_bytes=48 * 1024 * 1024,       # above v5e's 16 MiB default,
        ),                                           # within v7x's 64 MiB physical
    )(flat, emb, e_sq_half, ones_col)

    quantized = (q if n_rows_q == N else q[:N]).reshape(input_shape)
    encoding_indices = idx_out.reshape(-1)[:N]
    sse = sse_out.reshape(-1)[:N]                     # drop padded / garbage rows
    mse = jnp.sum(sse) / jnp.float32(N * D)
    # Forward value: q_latent_loss == e_latent_loss == MSE(quantized, inputs).
    loss = (1.0 + commitment_cost) * mse
    # TODO(synk): straight-through estimator and the distinct stop_gradient
    # placement of q_latent/e_latent losses need a custom_vjp for training use.
    return quantized, encoding_indices, loss


if __name__ == "__main__":
    num_embeddings = 64
    embedding_dim = 32
    commitment_cost = 0.25

    key = jax.random.PRNGKey(0)
    k_emb, k_small, k_mid, k_big = jax.random.split(key, 4)

    # nn.init.uniform_(weight, -1/K, 1/K)
    embeddings = jax.random.uniform(
        k_emb, (num_embeddings, embedding_dim), jnp.float32,
        minval=-1.0 / num_embeddings, maxval=1.0 / num_embeddings)

    def reference(x, emb, cc):
        flat = x.reshape(-1, emb.shape[1])
        dist = (jnp.sum(flat ** 2, 1, keepdims=True) + jnp.sum(emb ** 2, 1)
                - 2.0 * flat @ emb.T)
        idx = jnp.argmin(dist, axis=1).astype(jnp.int32)
        q = emb[idx].reshape(x.shape)
        loss = (1.0 + cc) * jnp.mean((q - x) ** 2)
        return q, idx, loss

    # Small example (single tile, N=16 < 128 -> tiny pad path).
    x_small = jax.random.normal(k_small, (2, 8, embedding_dim), jnp.float32)
    q, idx, loss = quantizer_forward(x_small, embeddings, commitment_cost)
    jax.block_until_ready((q, idx, loss))
    rq, ridx, rloss = reference(x_small, embeddings, commitment_cost)
    assert q.shape == x_small.shape and q.dtype == x_small.dtype
    assert idx.shape == (x_small.size // embedding_dim,)
    assert jnp.array_equal(idx, ridx)
    assert jnp.allclose(q, rq, atol=1e-5)
    assert jnp.allclose(loss, rloss, atol=1e-5, rtol=1e-5)

    # Exact-multiple case (N=2048 -> 2 balanced tiles of 1024, no ragged edge).
    x_mid = jax.random.normal(k_mid, (4, 512, embedding_dim), jnp.float32)
    qm, idxm, lossm = quantizer_forward(x_mid, embeddings, commitment_cost)
    jax.block_until_ready((qm, idxm, lossm))
    rqm, ridxm, rlossm = reference(x_mid, embeddings, commitment_cost)
    assert jnp.array_equal(idxm, ridxm)
    assert jnp.allclose(qm, rqm, atol=1e-5)
    assert jnp.allclose(lossm, rlossm, atol=1e-5, rtol=1e-5)

    # Ragged case (N=2100 -> 2 balanced tiles of 1152, clamped boundary block).
    x_big = jax.random.normal(k_big, (3, 700, embedding_dim), jnp.float32)
    qb, idxb, lossb = quantizer_forward(x_big, embeddings, commitment_cost)
    jax.block_until_ready((qb, idxb, lossb))
    rqb, ridxb, rlossb = reference(x_big, embeddings, commitment_cost)
    assert jnp.array_equal(idxb, ridxb)
    assert jnp.allclose(qb, rqb, atol=1e-5)
    assert jnp.allclose(lossb, rlossb, atol=1e-5, rtol=1e-5)

    print("KERNEL_OK")
</pallas_src>

<mosaic_0001>
module attributes {stable_mosaic.version = 11 : i64} {
  func.func @_vq_kernel(%arg0: i32, %arg1: memref<128x32xf32, #tpu.memory_space<vmem>>, %arg2: memref<128x32xf32, #tpu.memory_space<vmem>>, %arg3: memref<1x128xf32, #tpu.memory_space<vmem>>, %arg4: memref<32x1xf32, #tpu.memory_space<vmem>>, %arg5: memref<128x32xf32, #tpu.memory_space<vmem>>, %arg6: memref<1x1x128xi32, #tpu.memory_space<vmem>>, %arg7: memref<1x1x128xf32, #tpu.memory_space<vmem>>) attributes {dimension_semantics = [#tpu.dimension_semantics<parallel>], iteration_bounds = array<i64: 1>, scalar_prefetch = 0 : i64, scratch_operands = 0 : i64, tpu.core_type = #tpu.core_type<tc>, window_params = [{transform_indices = @transform_0, window_bounds = array<i64: 128, 32>}, {pipeline_mode = #tpu.pipeline_mode<synchronous>, transform_indices = @transform_1, window_bounds = array<i64: 128, 32>}, {pipeline_mode = #tpu.pipeline_mode<synchronous>, transform_indices = @transform_2, window_bounds = array<i64: 1, 128>}, {pipeline_mode = #tpu.pipeline_mode<synchronous>, transform_indices = @transform_3, window_bounds = array<i64: 32, 1>}, {transform_indices = @transform_4, window_bounds = array<i64: 128, 32>}, {transform_indices = @transform_5, window_bounds = array<i64: 1, 1, 128>}, {transform_indices = @transform_6, window_bounds = array<i64: 1, 1, 128>}]} {
    %c0 = arith.constant 0 : index
    %c0_0 = arith.constant 0 : index
    %0 = vector.load %arg1[%c0, %c0_0] : memref<128x32xf32, #tpu.memory_space<vmem>>, vector<128x32xf32>
    %c0_1 = arith.constant 0 : index
    %c0_2 = arith.constant 0 : index
    %1 = vector.load %arg2[%c0_1, %c0_2] : memref<128x32xf32, #tpu.memory_space<vmem>>, vector<128x32xf32>
    %c0_3 = arith.constant 0 : index
    %c0_4 = arith.constant 0 : index
    %2 = vector.load %arg3[%c0_3, %c0_4] : memref<1x128xf32, #tpu.memory_space<vmem>>, vector<1x128xf32>
    %cst = arith.constant dense<0.000000e+00> : vector<128x128xf32>
    %3 = tpu.matmul %0, %1, %cst {dimension_numbers = #tpu.dot_dimension_numbers<[1], [1], [0], [0], [0, 0, 1, 0], [], []>} : vector<128x32xf32>, vector<128x32xf32>, vector<128x128xf32> -> vector<128x128xf32>
    %4 = vector.broadcast %2 : vector<1x128xf32> to vector<128x128xf32>
    %5 = arith.subf %4, %3 : vector<128x128xf32>
    %6 = tpu.reduce_index %5 {axis = 1 : i32, kind = #tpu.reduction_kind<arg_min>} : vector<128x128xf32> -> vector<128xi32>
    %7 = tpu.iota {dimensions = array<i32: 1>} : vector<128x128xi32>
    %8 = vector.shape_cast %6 : vector<128xi32> to vector<128x1xi32>
    %9 = vector.broadcast %8 : vector<128x1xi32> to vector<128x128xi32>
    %10 = arith.cmpi eq, %7, %9 : vector<128x128xi32>
    %11 = arith.extui %10 : vector<128x128xi1> to vector<128x128xi32>
    %12 = arith.sitofp %11 : vector<128x128xi32> to vector<128x128xf32>
    %cst_5 = arith.constant dense<0.000000e+00> : vector<128x32xf32>
    %13 = tpu.matmul %12, %1, %cst_5 {dimension_numbers = #tpu.dot_dimension_numbers<[1], [0], [0], [1], [0, 0, 1, 1], [], []>} : vector<128x128xf32>, vector<128x32xf32>, vector<128x32xf32> -> vector<128x32xf32>
    %c0_6 = arith.constant 0 : index
    %c0_7 = arith.constant 0 : index
    %14 = vector.load %arg5[%c0_6, %c0_7] : memref<128x32xf32, #tpu.memory_space<vmem>>, vector<128x32xf32>
    tpu.vector_store %arg5[%c0_6, %c0_7], %13 {strides = array<i32>} : memref<128x32xf32, #tpu.memory_space<vmem>>, vector<128x32xf32>,
    %15 = vector.shape_cast %6 : vector<128xi32> to vector<1x1x128xi32>
    %c0_8 = arith.constant 0 : index
    %c0_9 = arith.constant 0 : index
    %c0_10 = arith.constant 0 : index
    %16 = vector.load %arg6[%c0_8, %c0_9, %c0_10] : memref<1x1x128xi32, #tpu.memory_space<vmem>>, vector<1x1x128xi32>
    tpu.vector_store %arg6[%c0_8, %c0_9, %c0_10], %15 {strides = array<i32>} : memref<1x1x128xi32, #tpu.memory_space<vmem>>, vector<1x1x128xi32>,
    %17 = arith.subf %13, %0 : vector<128x32xf32>
    %18 = arith.mulf %17, %17 : vector<128x32xf32>
    %c0_11 = arith.constant 0 : index
    %c0_12 = arith.constant 0 : index
    %19 = vector.load %arg4[%c0_11, %c0_12] : memref<32x1xf32, #tpu.memory_space<vmem>>, vector<32x1xf32>
    %cst_13 = arith.constant dense<0.000000e+00> : vector<128x1xf32>
    %20 = tpu.matmul %18, %19, %cst_13 {dimension_numbers = #tpu.dot_dimension_numbers<[1], [0], [0], [1], [0, 0, 1, 1], [], []>} : vector<128x32xf32>, vector<32x1xf32>, vector<128x1xf32> -> vector<128x1xf32>
    %21 = vector.shape_cast %20 : vector<128x1xf32> to vector<128xf32>
    %22 = vector.shape_cast %21 : vector<128xf32> to vector<1x1x128xf32>
    %c0_14 = arith.constant 0 : index
    %c0_15 = arith.constant 0 : index
    %c0_16 = arith.constant 0 : index
    %23 = vector.load %arg7[%c0_14, %c0_15, %c0_16] : memref<1x1x128xf32, #tpu.memory_space<vmem>>, vector<1x1x128xf32>
    tpu.vector_store %arg7[%c0_14, %c0_15, %c0_16], %22 {strides = array<i32>} : memref<1x1x128xf32, #tpu.memory_space<vmem>>, vector<1x1x128xf32>,
    return
  }
  func.func @transform_0(%arg0: i32) -> (i32, i32) {
    %c0_i32 = arith.constant 0 : i32
    %c0_i32_0 = arith.constant 0 : i32
    return %arg0, %c0_i32 : i32, i32
  }
  func.func @transform_1(%arg0: i32) -> (i32, i32) {
    %c0_i32 = arith.constant 0 : i32
    %c0_i32_0 = arith.constant 0 : i32
    %c0_i32_1 = arith.constant 0 : i32
    return %c0_i32, %c0_i32_0 : i32, i32
  }
  func.func @transform_2(%arg0: i32) -> (i32, i32) {
    %c0_i32 = arith.constant 0 : i32
    %c0_i32_0 = arith.constant 0 : i32
    %c0_i32_1 = arith.constant 0 : i32
    return %c0_i32, %c0_i32_0 : i32, i32
  }
  func.func @transform_3(%arg0: i32) -> (i32, i32) {
    %c0_i32 = arith.constant 0 : i32
    %c0_i32_0 = arith.constant 0 : i32
    %c0_i32_1 = arith.constant 0 : i32
    return %c0_i32, %c0_i32_0 : i32, i32
  }
  func.func @transform_4(%arg0: i32) -> (i32, i32) {
    %c0_i32 = arith.constant 0 : i32
    %c0_i32_0 = arith.constant 0 : i32
    return %arg0, %c0_i32 : i32, i32
  }
  func.func @transform_5(%arg0: i32) -> (i32, i32, i32) {
    %c0_i32 = arith.constant 0 : i32
    %c0_i32_0 = arith.constant 0 : i32
    %c0_i32_1 = arith.constant 0 : i32
    return %arg0, %c0_i32, %c0_i32_0 : i32, i32, i32
  }
  func.func @transform_6(%arg0: i32) -> (i32, i32, i32) {
    %c0_i32 = arith.constant 0 : i32
    %c0_i32_0 = arith.constant 0 : i32
    %c0_i32_1 = arith.constant 0 : i32
    return %arg0, %c0_i32, %c0_i32_0 : i32, i32, i32
  }
}

</mosaic_0001>

<bundles_post_ra>
// kernel: tpu_custom_call.1
= control target key start
LH: loop header
LB: loop body
LE: loop exit
PB: predicated region body
PF: predicated region fallthrough
CT: control target
= control target key end

     0   :  { %12 = vsyncpa [#allocation3], 0  ;;  %vm55_vm0 = vcmask 261120   ;;  %s2063_s0 = inlined_call_operand.vmem [shape: f32[128,32], index: 0, kind: input, shape index: {}]   ;;  %s2064_s1 = inlined_call_operand.vmem [shape: f32[128,32], index: 1, kind: input, shape index: {}]   ;;  %s2065_s2 = inlined_call_operand.vmem [shape: f32[1,128], index: 2, kind: input, shape index: {}]   ;;  %s2066_s3 = inlined_call_operand.vmem [shape: f32[32,1], index: 3, kind: input, shape index: {}]   ;;  %s2067_s4 = inlined_call_operand.vmem [shape: f32[128,32], index: 4, kind: output, shape index: {0}]   ;;  %s2068_s5 = inlined_call_operand.hbm [shape: s32[1,1,128], index: 5, kind: output, shape index: {1}]   ;;  %s2069_s6 = inlined_call_operand.hbm [shape: f32[1,1,128], index: 6, kind: output, shape index: {2}]  }
   0x1   :  { %v38_v0 = vld [vmem:[%s2064_s1] sm:$0xff]  ;;  %v39_v1 = vld [vmem:[%s2064_s1 + $0x8] sm:$0xff]  ;;  %v40_v2 = vld [vmem:[%s2064_s1 + $0x10] sm:$0xff] }
   0x2   :  { %v1387_v3 = vpack.c.bf16 %v39_v1, %v38_v0  ;;  %vm1579_vm1 = vmpackc.low %vm55_vm0, %vm55_vm0  ;;  %v41_v5 = vld [vmem:[%s2064_s1 + $0x18] sm:$0xff]  ;;  %v42_v7 = vld [vmem:[%s2064_s1 + $0x20] sm:$0xff] }
   0x3   :  { %v1393_v6 = vpack.c.bf16 %v41_v5, %v40_v2  ;;  %v43_v8 = vld [vmem:[%s2064_s1 + $0x28] sm:$0xff]  ;;  %v1601_v9 = vld [vmem:[%s2063_s0] sm:$0xff]  ;;  %v44_v11 = vld [vmem:[%s2064_s1 + $0x30] sm:$0xff] }
   0x4   :  { %1389 = vmatprep.subr.msk.bf16.mxu0 %vm1579_vm1, %v1387_v3  ;;  %1436 = vmatprep.subr.bf16.mxu1 %v1387_v3  ;;  %v1399_v10 = vpack.c.bf16 %v43_v8, %v42_v7  ;;  %v45_v12 = vld [vmem:[%s2064_s1 + $0x38] sm:$0xff] }
   0x5   :  { %1392 = vmatpush3.bf16.xpose.msk.msra.mxu0 %vm1579_vm1, %v1387_v3  ;;  %1438 = vmatpush3.bf16.msra.mxu1 %v1387_v3  ;;  %v1405_v13 = vpack.c.bf16 %v45_v12, %v44_v11 }
   0x6   :  { %1395 = vmatprep.subr.msk.bf16.mxu0 %vm1579_vm1, %v1393_v6  ;;  %1440 = vmatprep.subr.bf16.mxu1 %v1393_v6 }
   0x7   :  { %1275 = vmatprep.mubr.msk.f32.mxu0 %vm55_vm0, %v1601_v9 }
   0x9   :  { %1442 = vmatpush3.bf16.msra.mxu1 %v1393_v6 }
   0xa   :  { %1444 = vmatprep.subr.bf16.mxu1 %v1399_v10 }
   0xb   :  { %13 = vsyncpa [#allocation5], 0  ;;  %v46_v14 = vld [vmem:[%s2064_s1 + $0x40] sm:$0xff]  ;;  %v47_v15 = vld [vmem:[%s2064_s1 + $0x48] sm:$0xff]  ;;  %vm571_vm3 = vcmask 130112   ;;  %vm578_vm6 = vcmask 195712  }
   0xc   :  { %v1411_v16 = vpack.c.bf16 %v47_v15, %v46_v14  ;;  %v48_v17 = vld [vmem:[%s2064_s1 + $0x50] sm:$0xff]  ;;  %v49_v18 = vld [vmem:[%s2064_s1 + $0x58] sm:$0xff]  ;;  %v50_v20 = vld [vmem:[%s2064_s1 + $0x60] sm:$0xff]  ;;  %v351_v14 = vlaneseq  ;;  %vm585_vm7 = vcmask 261312   ;;  %vm592_vm10 = vcmask 326912  }
   0xd   :  { %1398 = vmatpush3.bf16.xpose.msk.msra.mxu0 %vm1579_vm1, %v1393_v6  ;;  %1446 = vmatpush3.bf16.msra.mxu1 %v1399_v10  ;;  %v1417_v19 = vpack.c.bf16 %v49_v18, %v48_v17  ;;  %v51_v21 = vld [vmem:[%s2064_s1 + $0x68] sm:$0xff]  ;;  %v52_v23 = vld [vmem:[%s2064_s1 + $0x70] sm:$0xff]  ;;  %v53_v24 = vld [vmem:[%s2064_s1 + $0x78] sm:$0xff]  ;;  %vm599_vm11 = vcmask 392512   ;;  %vm606_vm14 = vcmask 458112   ;;  %vm613_vm15 = vcmask 523712  }
   0xe   :  { %1401 = vmatprep.subr.msk.bf16.mxu0 %vm1579_vm1, %v1399_v10  ;;  %1448 = vmatprep.subr.bf16.mxu1 %v1405_v13  ;;  %v1423_v22 = vpack.c.bf16 %v51_v21, %v50_v20  ;;  %v1429_v25 = vpack.c.bf16 %v53_v24, %v52_v23  ;;  %v1664_v26 = vld [vmem:[%s2063_s0 + $0x8] sm:$0xff]  ;;  %v1669_v27 = vld [vmem:[%s2063_s0 + $0x10] sm:$0xff]  ;;  %v1678_v28 = vld [vmem:[%s2063_s0 + $0x18] sm:$0xff]  ;;  %v1775_v15 = vand.u32 127, %v351_v14 }
   0xf   :  { %v1683_v29 = vld [vmem:[%s2063_s0 + $0x20] sm:$0xff]  ;;  %v1692_v30 = vld [vmem:[%s2063_s0 + $0x28] sm:$0xff]  ;;  %v1697_v31 = vld [vmem:[%s2063_s0 + $0x30] sm:$0xff] }
  0x10   :  { %v1706_v32 = vld [vmem:[%s2063_s0 + $0x38] sm:$0xff]  ;;  %v1711_v33 = vld [vmem:[%s2063_s0 + $0x40] sm:$0xff]  ;;  %v1720_v34 = vld [vmem:[%s2063_s0 + $0x48] sm:$0xff]  ;;  %v566_v17 = vadd.s32 4294967288, %v1775_v15  ;;  %v573_v18 = vadd.s32 4294967280, %v1775_v15  ;;  %v580_v20 = vadd.s32 4294967272, %v1775_v15 }
  0x11   :  { %1450 = vmatpush3.bf16.msra.mxu1 %v1405_v13  ;;  %v1725_v35 = vld [vmem:[%s2063_s0 + $0x50] sm:$0xff]  ;;  %v1734_v36 = vld [vmem:[%s2063_s0 + $0x58] sm:$0xff]  ;;  %v1739_v37 = vld [vmem:[%s2063_s0 + $0x60] sm:$0xff] }
  0x12   :  { %1452 = vmatprep.subr.bf16.mxu1 %v1411_v16  ;;  %v1748_v38 = vld [vmem:[%s2063_s0 + $0x68] sm:$0xff]  ;;  %v1753_v39 = vld [vmem:[%s2063_s0 + $0x70] sm:$0xff]  ;;  %v1762_v40 = vld [vmem:[%s2063_s0 + $0x78] sm:$0xff] }
  0x13   :  { %v1110_v41 = vld [vmem:[%s2065_s2] ss:$0 sm:$0xff]  ;;  %v705_v12 = vld [vmem:[%s2066_s3 + $0x8] sm:$0xff]  ;;  %v706_v23 = vld [vmem:[%s2066_s3 + $0x10] sm:$0xff] }
  0x14   :  { %v704_v11 = vld [vmem:[%s2066_s3] sm:$0xff]  ;;  %v707_v24 = vld [vmem:[%s2066_s3 + $0x18] sm:$0xff] }
  0x15   :  { %1404 = vmatpush3.bf16.xpose.msk.msra.mxu0 %vm1579_vm1, %v1399_v10  ;;  %1454 = vmatpush3.bf16.msra.mxu1 %v1411_v16 }
  0x16   :  { %1407 = vmatprep.subr.msk.bf16.mxu0 %vm1579_vm1, %v1405_v13  ;;  %1456 = vmatprep.subr.bf16.mxu1 %v1417_v19 }
  0x19   :  { %1458 = vmatpush3.bf16.msra.mxu1 %v1417_v19 }
  0x1a   :  { %1460 = vmatprep.subr.bf16.mxu1 %v1423_v22 }
  0x1d   :  { %1410 = vmatpush3.bf16.xpose.msk.msra.mxu0 %vm1579_vm1, %v1405_v13  ;;  %1462 = vmatpush3.bf16.msra.mxu1 %v1423_v22  ;;  %v1467_v13 = vpack.c.bf16 %v705_v12, %v704_v11 }
  0x1e   :  { %1413 = vmatprep.subr.msk.bf16.mxu0 %vm1579_vm1, %v1411_v16  ;;  %1464 = vmatprep.subr.bf16.mxu1 %v1429_v25 }
  0x21   :  { %1466 = vmatpush3.bf16.msra.mxu1 %v1429_v25 }
  0x22   :  { %1468 = vmatprep.subr.bf16.mxu1 %v1467_v13 }
  0x25   :  { %1416 = vmatpush3.bf16.xpose.msk.msra.mxu0 %vm1579_vm1, %v1411_v16  ;;  %v1777_v16 = vshrl.u32 %v351_v14, 7 }
  0x26   :  { %1419 = vmatprep.subr.msk.bf16.mxu0 %vm1579_vm1, %v1417_v19 }
  0x27   :  { %v1784_v21 = vsub.s32 %v1775_v15, %v1777_v16 }
  0x2d   :  { %1422 = vmatpush3.bf16.xpose.msk.msra.mxu0 %vm1579_vm1, %v1417_v19 }
  0x2e   :  { %1425 = vmatprep.subr.msk.bf16.mxu0 %vm1579_vm1, %v1423_v22 }
  0x35   :  { %1428 = vmatpush3.bf16.xpose.msk.msra.mxu0 %vm1579_vm1, %v1423_v22  ;;  %v1788_v22 = vsub.s32 %v566_v17, %v1777_v16  ;;  %v636_v17 = vadd.s32 4294967208, %v1775_v15 }
  0x36   :  { %1431 = vmatprep.subr.msk.bf16.mxu0 %vm1579_vm1, %v1429_v25 }
  0x3d   :  { %1434 = vmatpush3.bf16.xpose.msk.msra.mxu0 %vm1579_vm1, %v1429_v25  ;;  %v1529_v25 = vmov 1.0  }
  0x44   :  { %1276 = vmatmul.mubr.msk.f32.vlgmr.msra.gmra.mrb[0].mxu0 %vm55_vm0, %v1664_v26 }
  0x45   :  { %1278 = vmatprep.mubr.msk.f32.mxu0 %vm55_vm0, %v1669_v27 }
  0x48   :  { %1279 = vmatmul.mubr.msk.f32.gmra.mrb[2].mxu0 %vm55_vm0, %v1678_v28 }
  0x49   :  { %1281 = vmatprep.mubr.msk.f32.mxu0 %vm55_vm0, %v1683_v29 }
  0x4c   :  { %1282 = vmatmul.mubr.msk.f32.gmra.mrb[4].mxu0 %vm55_vm0, %v1692_v30 }
  0x4d   :  { %1284 = vmatprep.mubr.msk.f32.mxu0 %vm55_vm0, %v1697_v31 }
  0x50   :  { %1285 = vmatmul.mubr.msk.f32.gmra.mrb[6].mxu0 %vm55_vm0, %v1706_v32 }
  0x51   :  { %1287 = vmatprep.mubr.msk.f32.mxu0 %vm55_vm0, %v1711_v33 }
  0x54   :  { %1288 = vmatmul.mubr.msk.f32.gmra.mrb[8].mxu0 %vm55_vm0, %v1720_v34 }
  0x55   :  { %1290 = vmatprep.mubr.msk.f32.mxu0 %vm55_vm0, %v1725_v35 }
  0x58   :  { %1291 = vmatmul.mubr.msk.f32.gmra.mrb[10].mxu0 %vm55_vm0, %v1734_v36 }
  0x59   :  { %1293 = vmatprep.mubr.msk.f32.mxu0 %vm55_vm0, %v1739_v37 }
  0x5c   :  { %1294 = vmatmul.mubr.msk.f32.gmra.mrb[12].mxu0 %vm55_vm0, %v1748_v38 }
  0x5d   :  { %1296 = vmatprep.mubr.msk.f32.mxu0 %vm55_vm0, %v1753_v39 }
  0x60   :  { %1297 = vmatmul.mubr.msk.f32.gmra.mrb[14].mxu0 %vm55_vm0, %v1762_v40 }
 0x117   :  { %v1277_v42 = vpop.f32.mrb[0].mxu0 }
 0x118   :  { %v218_v43 = vpop.f32.mrb[1].mxu0  ;;  %v304_v47 = vsub.f32 %v1110_v41, %v1277_v42  ;;  %v587_v42 = vadd.s32 4294967264, %v1775_v15 }
 0x119   :  { %v303_v44 = vsub.f32 %v1110_v41, %v218_v43 }
 0x11b   :  { %319 = vmin.index.xlane.f32.xlu0 %v303_v44  ;;  %v1280_v45 = vpop.f32.mrb[2].mxu0 }
 0x11c   :  { %v228_v46 = vpop.f32.mrb[3].mxu0  ;;  %v306_v51 = vsub.f32 %v1110_v41, %v1280_v45  ;;  %v1802_v45 = vsub.s32 %v580_v20, %v1777_v16 }
 0x11d   :  { %v305_v48 = vsub.f32 %v1110_v41, %v228_v46  ;;  %v594_v46 = vadd.s32 4294967256, %v1775_v15 }
 0x11f   :  { %321 = vmin.index.xlane.f32.xlu0 %v304_v47  ;;  %323 = vmin.index.xlane.f32.xlu1 %v305_v48  ;;  %v1283_v49 = vpop.f32.mrb[4].mxu0  ;;  %v1471_v47 = vpack.c.bf16 %v707_v24, %v706_v23  ;;  %v643_v23 = vadd.s32 4294967200, %v1775_v15 }
 0x120   :  { %v238_v50 = vpop.f32.mrb[5].mxu0  ;;  %v308_v53 = vsub.f32 %v1110_v41, %v1283_v49 }
 0x121   :  { %v307_v52 = vsub.f32 %v1110_v41, %v238_v50 }
 0x123   :  { %325 = vmin.index.xlane.f32.xlu1 %v306_v51  ;;  %327 = vmin.index.xlane.f32.xlu0 %v307_v52  ;;  %v1286_v54 = vpop.f32.mrb[6].mxu0  ;;  %v1812_v51 = vsub.s32 %v587_v42, %v1777_v16  ;;  %v601_v52 = vadd.s32 4294967248, %v1775_v15 }
 0x124   :  { %v248_v55 = vpop.f32.mrb[7].mxu0  ;;  %v310_v57 = vsub.f32 %v1110_v41, %v1286_v54 }
 0x125   :  { %v309_v56 = vsub.f32 %v1110_v41, %v248_v55 }
 0x127   :  { %329 = vmin.index.xlane.f32.xlu1 %v308_v53  ;;  %331 = vmin.index.xlane.f32.xlu0 %v309_v56  ;;  %v1289_v58 = vpop.f32.mrb[8].mxu0  ;;  %v1818_v56 = vsub.s32 %v594_v46, %v1777_v16 }
 0x128   :  { %v258_v59 = vpop.f32.mrb[9].mxu0  ;;  %v312_v61 = vsub.f32 %v1110_v41, %v1289_v58  ;;  %v608_v58 = vadd.s32 4294967240, %v1775_v15 }
 0x129   :  { %v311_v60 = vsub.f32 %v1110_v41, %v258_v59 }
 0x12b   :  { %333 = vmin.index.xlane.f32.xlu1 %v310_v57  ;;  %335 = vmin.index.xlane.f32.xlu0 %v311_v60  ;;  %v1292_v62 = vpop.f32.mrb[10].mxu0 }
 0x12c   :  { %v268_v63 = vpop.f32.mrb[11].mxu0  ;;  %v314_v1 = vsub.f32 %v1110_v41, %v1292_v62  ;;  %v615_v62 = vadd.s32 4294967232, %v1775_v15 }
 0x12d   :  { %v313_v0 = vsub.f32 %v1110_v41, %v268_v63 }
 0x12f   :  { %337 = vmin.index.xlane.f32.xlu1 %v312_v61  ;;  %339 = vmin.index.xlane.f32.xlu0 %v313_v0  ;;  %v1295_v2 = vpop.f32.mrb[12].mxu0  ;;  %v1828_v61 = vsub.s32 %v601_v52, %v1777_v16  ;;  %v657_v52 = vadd.s32 4294967184, %v1775_v15 }
 0x130   :  { %v278_v3 = vpop.f32.mrb[13].mxu0  ;;  %v316_v5 = vsub.f32 %v1110_v41, %v1295_v2  ;;  %v622_v2 = vadd.s32 4294967224, %v1775_v15 }
 0x131   :  { %v315_v4 = vsub.f32 %v1110_v41, %v278_v3 }
 0x133   :  { %341 = vmin.index.xlane.f32.xlu1 %v314_v1  ;;  %343 = vmin.index.xlane.f32.xlu0 %v315_v4  ;;  %v1298_v6 = vpop.f32.mrb[14].mxu0  ;;  %v1838_v4 = vsub.s32 %v608_v58, %v1777_v16 }
 0x134   :  { %v288_v7 = vpop.f32.mrb[15].mxu0  ;;  %v318_v10 = vsub.f32 %v1110_v41, %v1298_v6 }
 0x135   :  { %v317_v8 = vsub.f32 %v1110_v41, %v288_v7  ;;  %v1798_v41 = vsub.s32 %v573_v18, %v1777_v16  ;;  %v1844_v7 = vsub.s32 %v615_v62, %v1777_v16 }
 0x137   :  { %345 = vmin.index.xlane.f32.xlu1 %v316_v5  ;;  %347 = vmin.index.xlane.f32.xlu0 %v317_v8  ;;  %v629_v8 = vadd.s32 4294967216, %v1775_v15 }
 0x139   :  { %v1860_v20 = vsub.s32 %v629_v8, %v1777_v16 }
 0x13b   :  { %349 = vmin.index.xlane.f32.xlu1 %v318_v10 }
 0x1a8   :  { %v320_v19 = vpop.xlane.xlu0 %319 }
 0x1a9   :  { %vm353_vm2 = vcmp.eq.s32.totalorder %v1775_v15, %v320_v19  ;;  %v565_v48 = vrot.slane %v320_v19, %v1784_v21 }
 0x1aa   :  { %1331 = vmatprep.mubr.msk.f32.mxu1 %vm353_vm2, %v1529_v25 }
 0x1ac   :  { %v322_v43 = vpop.xlane.xlu0 %321  ;;  %v324_v44 = vpop.xlane.xlu1 %323 }
 0x1ad   :  { %vm354_vm4 = vcmp.eq.s32.totalorder %v1775_v15, %v322_v43  ;;  %v570_v49 = vrot.slane %v322_v43, %v1788_v22  ;;  %vm355_vm5 = vcmp.eq.s32.totalorder %v1775_v15, %v324_v44  ;;  %v577_v50 = vrot.slane %v324_v44, %v1798_v41 }
 0x1ae   :  { %1332 = vmatmul.mubr.msk.f32.vlgmr.msra.gmra.mrb[0].mxu1 %vm354_vm4, %v1529_v25  ;;  %vm620_vm4 = vcmask 589312   ;;  %v650_v44 = vadd.s32 4294967192, %v1775_v15 }
 0x1af   :  { %v572_v53 = vsel %vm571_vm3, %v570_v49, %v565_v48  ;;  %1334 = vmatprep.mubr.msk.f32.mxu1 %vm355_vm5, %v1529_v25  ;;  %1470 = vmatpush3.bf16.msra.mxu1 %v1467_v13  ;;  %v1850_v13 = vsub.s32 %v622_v2, %v1777_v16  ;;  %vm2070_vm5 = vcmask 654912  }
 0x1b0   :  { %v326_v54 = vpop.xlane.xlu1 %325  ;;  %v328_v55 = vpop.xlane.xlu0 %327  ;;  %1472 = vmatprep.subr.bf16.mxu1 %v1471_v47  ;;  %v579_v59 = vsel %vm578_vm6, %v577_v50, %v572_v53  ;;  %v1876_v50 = vsub.s32 %v643_v23, %v1777_v16 }
 0x1b1   :  { %vm356_vm8 = vcmp.eq.s32.totalorder %v1775_v15, %v326_v54  ;;  %v584_v57 = vrot.slane %v326_v54, %v1802_v45  ;;  %vm357_vm9 = vcmp.eq.s32.totalorder %v1775_v15, %v328_v55  ;;  %v591_v60 = vrot.slane %v328_v55, %v1812_v51 }
 0x1b2   :  { %1335 = vmatmul.mubr.msk.f32.gmra.mrb[2].mxu1 %vm356_vm8, %v1529_v25 }
 0x1b3   :  { %v586_v63 = vsel %vm585_vm7, %v584_v57, %v579_v59  ;;  %1337 = vmatprep.mubr.msk.f32.mxu1 %vm357_vm9, %v1529_v25  ;;  %1474 = vmatpush3.bf16.msra.mxu1 %v1471_v47  ;;  %v1870_v47 = vsub.s32 %v636_v17, %v1777_v16  ;;  %v1882_v57 = vsub.s32 %v650_v44, %v1777_v16  ;;  %v664_v59 = vadd.s32 4294967176, %v1775_v15 }
 0x1b4   :  { %v330_v0 = vpop.xlane.xlu1 %329  ;;  %v332_v1 = vpop.xlane.xlu0 %331  ;;  %v593_v5 = vsel %vm592_vm10, %v591_v60, %v586_v63  ;;  %v1892_v63 = vsub.s32 %v657_v52, %v1777_v16  ;;  %v1530_v17 = vmov 0  }
 0x1b5   :  { %vm358_vm12 = vcmp.eq.s32.totalorder %v1775_v15, %v330_v0  ;;  %v598_v3 = vrot.slane %v330_v0, %v1818_v56  ;;  %vm359_vm13 = vcmp.eq.s32.totalorder %v1775_v15, %v332_v1  ;;  %v605_v6 = vrot.slane %v332_v1, %v1828_v61  ;;  %1479 = vset.pattern.permute.xlu1 %v1530_v17 }
 0x1b6   :  { %1338 = vmatmul.mubr.msk.f32.gmra.mrb[4].mxu1 %vm358_vm12, %v1529_v25  ;;  %vm2071_vm12 = vcmask 720512   ;;  %1480 = vset.pattern.permute.xlu0 %v1530_v17 }
 0x1b7   :  { %v600_v10 = vsel %vm599_vm11, %v598_v3, %v593_v5  ;;  %1340 = vmatprep.mubr.msk.f32.mxu1 %vm359_vm13, %v1529_v25  ;;  %vm2072_vm13 = vcmask 786112   ;;  %v1900_v5 = vsub.s32 %v664_v59, %v1777_v16 }
 0x1b8   :  { %v334_v11 = vpop.xlane.xlu1 %333  ;;  %v336_v12 = vpop.xlane.xlu0 %335  ;;  %v607_v18 = vsel %vm606_vm14, %v605_v6, %v600_v10 }
 0x1b9   :  { %vm360_vm1 = vcmp.eq.s32.totalorder %v1775_v15, %v334_v11  ;;  %v612_v14 = vrot.slane %v334_v11, %v1838_v4  ;;  %vm361_vm2 = vcmp.eq.s32.totalorder %v1775_v15, %v336_v12  ;;  %v619_v19 = vrot.slane %v336_v12, %v1844_v7 }
 0x1ba   :  { %1341 = vmatmul.mubr.msk.f32.gmra.mrb[6].mxu1 %vm360_vm1, %v1529_v25 }
 0x1bb   :  { %v614_v24 = vsel %vm613_vm15, %v612_v14, %v607_v18  ;;  %1343 = vmatprep.mubr.msk.f32.mxu1 %vm361_vm2, %v1529_v25 }
 0x1bc   :  { %v338_v42 = vpop.xlane.xlu1 %337  ;;  %v340_v43 = vpop.xlane.xlu0 %339  ;;  %v621_v48 = vsel %vm620_vm4, %v619_v19, %v614_v24 }
 0x1bd   :  { %vm362_vm8 = vcmp.eq.s32.totalorder %v1775_v15, %v338_v42  ;;  %v626_v46 = vrot.slane %v338_v42, %v1850_v13  ;;  %vm363_vm9 = vcmp.eq.s32.totalorder %v1775_v15, %v340_v43  ;;  %v633_v49 = vrot.slane %v340_v43, %v1860_v20 }
 0x1be   :  { %1344 = vmatmul.mubr.msk.f32.gmra.mrb[8].mxu1 %vm362_vm8, %v1529_v25  ;;  %vm648_vm8 = vcmask 851712  }
 0x1bf   :  { %v628_v53 = vsel %vm2070_vm5, %v626_v46, %v621_v48  ;;  %1346 = vmatprep.mubr.msk.f32.mxu1 %vm363_vm9, %v1529_v25  ;;  %vm655_vm9 = vcmask 917312  }
 0x1c0   :  { %v342_v54 = vpop.xlane.xlu1 %341  ;;  %v344_v55 = vpop.xlane.xlu0 %343  ;;  %v635_v60 = vsel %vm2071_vm12, %v633_v49, %v628_v53 }
 0x1c1   :  { %vm364_vm1 = vcmp.eq.s32.totalorder %v1775_v15, %v342_v54  ;;  %v640_v58 = vrot.slane %v342_v54, %v1870_v47  ;;  %vm365_vm2 = vcmp.eq.s32.totalorder %v1775_v15, %v344_v55  ;;  %v647_v62 = vrot.slane %v344_v55, %v1876_v50 }
 0x1c2   :  { %1347 = vmatmul.mubr.msk.f32.gmra.mrb[10].mxu1 %vm364_vm1, %v1529_v25  ;;  %vm662_vm1 = vcmask 982912  }
 0x1c3   :  { %v642_v0 = vsel %vm2072_vm13, %v640_v58, %v635_v60  ;;  %1349 = vmatprep.mubr.msk.f32.mxu1 %vm365_vm2, %v1529_v25  ;;  %vm669_vm2 = vcmask 1048512  }
 0x1c4   :  { %v346_v1 = vpop.xlane.xlu1 %345  ;;  %v348_v2 = vpop.xlane.xlu0 %347  ;;  %v649_v6 = vsel %vm648_vm8, %v647_v62, %v642_v0 }
 0x1c5   :  { %vm366_vm5 = vcmp.eq.s32.totalorder %v1775_v15, %v346_v1  ;;  %v654_v3 = vrot.slane %v346_v1, %v1882_v57  ;;  %vm367_vm12 = vcmp.eq.s32.totalorder %v1775_v15, %v348_v2  ;;  %v661_v8 = vrot.slane %v348_v2, %v1892_v63 }
 0x1c6   :  { %1350 = vmatmul.mubr.msk.f32.gmra.mrb[12].mxu1 %vm366_vm5, %v1529_v25 }
 0x1c7   :  { %1352 = vmatprep.mubr.msk.f32.mxu1 %vm367_vm12, %v1529_v25  ;;  %v656_v10 = vsel %vm655_vm9, %v654_v3, %v649_v6 }
 0x1c8   :  { %v350_v11 = vpop.xlane.xlu1 %349  ;;  %v663_v16 = vsel %vm662_vm1, %v661_v8, %v656_v10 }
 0x1c9   :  { %vm368_vm13 = vcmp.eq.s32.totalorder %v1775_v15, %v350_v11  ;;  %v668_v12 = vrot.slane %v350_v11, %v1900_v5 }
 0x1ca   :  { %1353 = vmatmul.mubr.msk.f32.gmra.mrb[14].mxu1 %vm368_vm13, %v1529_v25 }
 0x1cb   :  { %v670_v14 = vsel %vm669_vm2, %v668_v12, %v663_v16 }
 0x1cc   :  { %671 = vst [vmem:[#allocation2] sm:$0x1] %v670_v14 }
 0x281   :  { %v1333_v18 = vpop.f32.mrb[0].mxu1 }
 0x282   :  { %547 = vst.msk [vmem:[%s2067_s4 + $0x8] sm:$0xff] %vm55_vm0, %v1333_v18  ;;  %v673_v15 = vsub.f32 %v1333_v18, %v1664_v26  ;;  %v467_v19 = vpop.f32.mrb[1].mxu1 }
 0x283   :  { %546 = vst.msk [vmem:[%s2067_s4] sm:$0xff] %vm55_vm0, %v467_v19  ;;  %v672_v25 = vsub.f32 %v467_v19, %v1601_v9 }
 0x284   :  { %v689_v42 = vmul.f32 %v673_v15, %v673_v15 }
 0x285   :  { %v688_v23 = vmul.f32 %v672_v25, %v672_v25  ;;  %v1336_v24 = vpop.f32.mrb[2].mxu1 }
 0x286   :  { %549 = vst.msk [vmem:[%s2067_s4 + $0x18] sm:$0xff] %vm55_vm0, %v1336_v24  ;;  %v675_v43 = vsub.f32 %v1336_v24, %v1678_v28  ;;  %v477_v44 = vpop.f32.mrb[3].mxu1 }
 0x287   :  { %548 = vst.msk [vmem:[%s2067_s4 + $0x10] sm:$0xff] %vm55_vm0, %v477_v44  ;;  %v674_v26 = vsub.f32 %v477_v44, %v1669_v27  ;;  %1363 = vmatprep.mubr.msk.f32.mxu1 %vm55_vm0, %v688_v23 }
 0x288   :  { %1364 = vmatmul.mubr.msk.f32.vlgmr.msra.gmra.mrb[16].mxu1 %vm55_vm0, %v689_v42  ;;  %v691_v48 = vmul.f32 %v675_v43, %v675_v43 }
 0x289   :  { %v690_v9 = vmul.f32 %v674_v26, %v674_v26  ;;  %v1339_v46 = vpop.f32.mrb[4].mxu1 }
 0x28a   :  { %551 = vst.msk [vmem:[%s2067_s4 + $0x28] sm:$0xff] %vm55_vm0, %v1339_v46  ;;  %v677_v28 = vsub.f32 %v1339_v46, %v1692_v30  ;;  %v487_v49 = vpop.f32.mrb[5].mxu1 }
 0x28b   :  { %550 = vst.msk [vmem:[%s2067_s4 + $0x20] sm:$0xff] %vm55_vm0, %v487_v49  ;;  %v676_v27 = vsub.f32 %v487_v49, %v1683_v29  ;;  %1366 = vmatprep.mubr.msk.f32.mxu1 %vm55_vm0, %v690_v9 }
 0x28c   :  { %v693_v52 = vmul.f32 %v677_v28, %v677_v28  ;;  %1367 = vmatmul.mubr.msk.f32.gmra.mrb[18].mxu1 %vm55_vm0, %v691_v48 }
 0x28d   :  { %v692_v53 = vmul.f32 %v676_v27, %v676_v27  ;;  %v1342_v54 = vpop.f32.mrb[6].mxu1 }
 0x28e   :  { %553 = vst.msk [vmem:[%s2067_s4 + $0x38] sm:$0xff] %vm55_vm0, %v1342_v54  ;;  %v679_v30 = vsub.f32 %v1342_v54, %v1706_v32  ;;  %v497_v55 = vpop.f32.mrb[7].mxu1 }
 0x28f   :  { %552 = vst.msk [vmem:[%s2067_s4 + $0x30] sm:$0xff] %vm55_vm0, %v497_v55  ;;  %v678_v29 = vsub.f32 %v497_v55, %v1697_v31  ;;  %1369 = vmatprep.mubr.msk.f32.mxu1 %vm55_vm0, %v692_v53 }
 0x290   :  { %v695_v58 = vmul.f32 %v679_v30, %v679_v30  ;;  %1370 = vmatmul.mubr.msk.f32.gmra.mrb[20].mxu1 %vm55_vm0, %v693_v52 }
 0x291   :  { %v694_v59 = vmul.f32 %v678_v29, %v678_v29  ;;  %v1345_v60 = vpop.f32.mrb[8].mxu1 }
 0x292   :  { %555 = vst.msk [vmem:[%s2067_s4 + $0x48] sm:$0xff] %vm55_vm0, %v1345_v60  ;;  %v681_v32 = vsub.f32 %v1345_v60, %v1720_v34  ;;  %v507_v62 = vpop.f32.mrb[9].mxu1 }
 0x293   :  { %554 = vst.msk [vmem:[%s2067_s4 + $0x40] sm:$0xff] %vm55_vm0, %v507_v62  ;;  %v680_v31 = vsub.f32 %v507_v62, %v1711_v33  ;;  %1372 = vmatprep.mubr.msk.f32.mxu1 %vm55_vm0, %v694_v59 }
 0x294   :  { %v697_v0 = vmul.f32 %v681_v32, %v681_v32  ;;  %1373 = vmatmul.mubr.msk.f32.gmra.mrb[22].mxu1 %vm55_vm0, %v695_v58 }
 0x295   :  { %v696_v1 = vmul.f32 %v680_v31, %v680_v31  ;;  %v1348_v2 = vpop.f32.mrb[10].mxu1 }
 0x296   :  { %557 = vst.msk [vmem:[%s2067_s4 + $0x58] sm:$0xff] %vm55_vm0, %v1348_v2  ;;  %v683_v34 = vsub.f32 %v1348_v2, %v1734_v36  ;;  %v517_v3 = vpop.f32.mrb[11].mxu1 }
 0x297   :  { %556 = vst.msk [vmem:[%s2067_s4 + $0x50] sm:$0xff] %vm55_vm0, %v517_v3  ;;  %v682_v33 = vsub.f32 %v517_v3, %v1725_v35  ;;  %1375 = vmatprep.mubr.msk.f32.mxu1 %vm55_vm0, %v696_v1 }
 0x298   :  { %v699_v6 = vmul.f32 %v683_v34, %v683_v34  ;;  %1376 = vmatmul.mubr.msk.f32.gmra.mrb[24].mxu1 %vm55_vm0, %v697_v0 }
 0x299   :  { %v698_v8 = vmul.f32 %v682_v33, %v682_v33  ;;  %v1351_v10 = vpop.f32.mrb[12].mxu1 }
 0x29a   :  { %559 = vst.msk [vmem:[%s2067_s4 + $0x68] sm:$0xff] %vm55_vm0, %v1351_v10  ;;  %v685_v36 = vsub.f32 %v1351_v10, %v1748_v38  ;;  %v527_v11 = vpop.f32.mrb[13].mxu1 }
 0x29b   :  { %558 = vst.msk [vmem:[%s2067_s4 + $0x60] sm:$0xff] %vm55_vm0, %v527_v11  ;;  %v684_v35 = vsub.f32 %v527_v11, %v1739_v37  ;;  %1378 = vmatprep.mubr.msk.f32.mxu1 %vm55_vm0, %v698_v8 }
 0x29c   :  { %v701_v12 = vmul.f32 %v685_v36, %v685_v36  ;;  %1379 = vmatmul.mubr.msk.f32.gmra.mrb[26].mxu1 %vm55_vm0, %v699_v6 }
 0x29d   :  { %v700_v16 = vmul.f32 %v684_v35, %v684_v35  ;;  %v1354_v14 = vpop.f32.mrb[14].mxu1 }
 0x29e   :  { %561 = vst.msk [vmem:[%s2067_s4 + $0x78] sm:$0xff] %vm55_vm0, %v1354_v14  ;;  %v687_v38 = vsub.f32 %v1354_v14, %v1762_v40  ;;  %v537_v17 = vpop.f32.mrb[15].mxu1 }
 0x29f   :  { %560 = vst.msk [vmem:[%s2067_s4 + $0x70] sm:$0xff] %vm55_vm0, %v537_v17  ;;  %v686_v37 = vsub.f32 %v537_v17, %v1753_v39  ;;  %1381 = vmatprep.mubr.msk.f32.mxu1 %vm55_vm0, %v700_v16  ;;  %s1531_s4 = smov [#allocation2]  }
 0x2a0   :  { %v703_v18 = vmul.f32 %v687_v38, %v687_v38  ;;  %1382 = vmatmul.mubr.msk.f32.gmra.mrb[28].mxu1 %vm55_vm0, %v701_v12  ;;  %s1054_s22 = sshll.u32 %s1531_s4, 4  ;;  %s1055_s22 = int_to_ptr.vmem [resolvable:$true] %s1054_s22 }
 0x2a1   :  { %v702_v15 = vmul.f32 %v686_v37, %v686_v37  ;;  %s1481_s23 = scalar_lea.vmem %s1055_s22, 16  ;;  %s1485_s24 = scalar_lea.vmem %s1055_s22, 32 }
 0x2a2   :  { %p1482_p0 = scmp.ne.s32.totalorder %s1055_s22, %s1481_s23  ;;  %p1486_p1 = scmp.lt.s32.totalorder %s1055_s22, %s1055_s22 }
 0x2a3   :  { %1384 = vmatprep.mubr.msk.f32.mxu1 %vm55_vm0, %v702_v15  ;;  %p1487_p2 = scmp.lt.s32.totalorder %s1485_s24, %s1481_s23 }
 0x2a4   :  { %1385 = vmatmul.mubr.msk.f32.gmra.mrb[30].mxu1 %vm55_vm0, %v703_v18 }
 0x2a5   :  { %p1488_p3 = por %p1487_p2, %p1486_p1 }
 0x2a7   :  { %p1489_p4 = pnand %p1488_p3, %p1482_p0 }
 0x35b   :  { %v1365_v19 = vpop.f32.mrb[16].mxu1 }
 0x35c   :  { %921 = vperm.xlu1 %1479, %v1365_v19   ;;  %v822_v40 = vpop.f32.mrb[17].mxu1 }
 0x35d   :  { %918 = vperm.xlu0 %1480, %v822_v40  }
 0x35f   :  { %v1368_v25 = vpop.f32.mrb[18].mxu1 }
 0x360   :  { %927 = vperm.xlu1 %1479, %v1368_v25   ;;  %v832_v23 = vpop.f32.mrb[19].mxu1 }
 0x363   :  { %v1371_v24 = vpop.f32.mrb[20].mxu1 }
 0x364   :  { %924 = vperm.xlu1 %1479, %v832_v23   ;;  %v842_v39 = vpop.f32.mrb[21].mxu1 }
 0x367   :  { %v1374_v42 = vpop.f32.mrb[22].mxu1 }
 0x368   :  { %933 = vperm.xlu1 %1479, %v1371_v24   ;;  %v852_v43 = vpop.f32.mrb[23].mxu1 }
 0x36b   :  { %v1377_v44 = vpop.f32.mrb[24].mxu1 }
 0x36c   :  { %930 = vperm.xlu1 %1479, %v842_v39   ;;  %945 = vperm.xlu0 %1480, %v1377_v44   ;;  %v862_v26 = vpop.f32.mrb[25].mxu1 }
 0x36f   :  { %v1380_v9 = vpop.f32.mrb[26].mxu1 }
 0x370   :  { %939 = vperm.xlu1 %1479, %v1374_v42   ;;  %951 = vperm.xlu0 %1480, %v1380_v9   ;;  %v872_v46 = vpop.f32.mrb[27].mxu1 }
 0x373   :  { %v1383_v48 = vpop.f32.mrb[28].mxu1 }
 0x374   :  { %936 = vperm.xlu1 %1479, %v852_v43   ;;  %957 = vperm.xlu0 %1480, %v1383_v48   ;;  %v882_v28 = vpop.f32.mrb[29].mxu1 }
 0x377   :  { %v1386_v49 = vpop.f32.mrb[30].mxu1 }
 0x378   :  { %942 = vperm.xlu1 %1479, %v862_v26   ;;  %963 = vperm.xlu0 %1480, %v1386_v49   ;;  %v892_v27 = vpop.f32.mrb[31].mxu1 }
 0x37c   :  { %948 = vperm.xlu1 %1479, %v872_v46  }
 0x380   :  { %954 = vperm.xlu1 %1479, %v882_v28  }
 0x384   :  { %960 = vperm.xlu1 %1479, %v892_v27  }
 0x385   :  { %1492 = shalt.err (!%p1489_p4)
}
 0x386   :  { %s1493_s27 = scalar_lea.hbm %s2068_s5, 16 }
 0x387   :  { %p1494_p5 = scmp.ne.s32.totalorder %s2068_s5, %s1493_s27  ;;  %p1497_p6 = scmp.lt.u32.totalorder %s1493_s27, %s2068_s5 }
 0x389   :  { %p1499_p7 = pnand %p1497_p6, %p1494_p5 }
 0x38b   :  { %1502 = shalt.err (!%p1499_p7)
}
 0x38c   :  { %1057 = dma.vmem_to_hbm [thread:$0]  %s1055_s22, 16, %s2068_s5, [#allocation3]   ;;  %vm2075_vm0 = vcmask 654912  }
 0x38d   :  { %s1532_s5 = smov [#allocation4]  }
 0x38e   :  { %s1064_s9 = sshll.u32 %s1532_s5, 4  ;;  %s1065_s9 = int_to_ptr.vmem [resolvable:$true] %s1064_s9 }
 0x38f   :  { %s1503_s10 = scalar_lea.vmem %s1065_s9, 16  ;;  %s1507_s11 = scalar_lea.vmem %s1065_s9, 32 }
 0x390   :  { %p1504_p8 = scmp.ne.s32.totalorder %s1065_s9, %s1503_s10  ;;  %p1508_p9 = scmp.lt.s32.totalorder %s1065_s9, %s1065_s9 }
 0x391   :  { %p1509_p10 = scmp.lt.s32.totalorder %s1507_s11, %s1503_s10 }
 0x393   :  { %p1510_p11 = por %p1509_p10, %p1508_p9 }
 0x395   :  { %p1511_p12 = pnand %p1510_p11, %p1504_p8 }
 0x3db   :  { %v922_v52 = vpop.permute.xlu1 %921 }
 0x3dc   :  { %v919_v30 = vpop.permute.xlu0 %918  ;;  %v972_v29 = vrot.slane %v922_v52, %v1788_v22 }
 0x3dd   :  { %v968_v58 = vrot.slane %v919_v30, %v1784_v21 }
 0x3df   :  { %v928_v53 = vpop.permute.xlu1 %927  ;;  %v973_v32 = vsel %vm571_vm3, %v972_v29, %v968_v58  ;;  %vm2076_vm3 = vcmask 720512  }
 0x3e0   :  { %v982_v0 = vrot.slane %v928_v53, %v1802_v45 }
 0x3e3   :  { %v925_v54 = vpop.permute.xlu1 %924 }
 0x3e4   :  { %v977_v59 = vrot.slane %v925_v54, %v1798_v41 }
 0x3e6   :  { %v978_v62 = vsel %vm578_vm6, %v977_v59, %v973_v32  ;;  %vm2077_vm6 = vcmask 786112  }
 0x3e7   :  { %v934_v55 = vpop.permute.xlu1 %933  ;;  %v983_v34 = vsel %vm585_vm7, %v982_v0, %v978_v62 }
 0x3e8   :  { %v992_v22 = vrot.slane %v934_v55, %v1818_v56 }
 0x3eb   :  { %v931_v60 = vpop.permute.xlu1 %930  ;;  %v946_v2 = vpop.permute.xlu0 %945 }
 0x3ec   :  { %v987_v31 = vrot.slane %v931_v60, %v1812_v51  ;;  %v1012_v35 = vrot.slane %v946_v2, %v1850_v13 }
 0x3ee   :  { %v988_v3 = vsel %vm592_vm10, %v987_v31, %v983_v34 }
 0x3ef   :  { %v940_v1 = vpop.permute.xlu1 %939  ;;  %v993_v33 = vsel %vm599_vm11, %v992_v22, %v988_v3  ;;  %v952_v6 = vpop.permute.xlu0 %951 }
 0x3f0   :  { %v1002_v51 = vrot.slane %v940_v1, %v1838_v4  ;;  %v1022_v38 = vrot.slane %v952_v6, %v1870_v47 }
 0x3f3   :  { %v937_v21 = vpop.permute.xlu1 %936  ;;  %v958_v12 = vpop.permute.xlu0 %957 }
 0x3f4   :  { %v997_v41 = vrot.slane %v937_v21, %v1828_v61  ;;  %v1032_v13 = vrot.slane %v958_v12, %v1882_v57 }
 0x3f6   :  { %v998_v8 = vsel %vm606_vm14, %v997_v41, %v993_v33 }
 0x3f7   :  { %v943_v10 = vpop.permute.xlu1 %942  ;;  %v1003_v36 = vsel %vm613_vm15, %v1002_v51, %v998_v8  ;;  %v964_v37 = vpop.permute.xlu0 %963 }
 0x3f8   :  { %v1007_v45 = vrot.slane %v943_v10, %v1844_v7  ;;  %v1042_v19 = vrot.slane %v964_v37, %v1900_v5 }
 0x3fa   :  { %v1008_v11 = vsel %vm620_vm4, %v1007_v45, %v1003_v36 }
 0x3fb   :  { %v949_v56 = vpop.permute.xlu1 %948  ;;  %v1013_v16 = vsel %vm2075_vm0, %v1012_v35, %v1008_v11 }
 0x3fc   :  { %v1017_v61 = vrot.slane %v949_v56, %v1860_v20 }
 0x3fe   :  { %v1018_v14 = vsel %vm2076_vm3, %v1017_v61, %v1013_v16 }
 0x3ff   :  { %v955_v4 = vpop.permute.xlu1 %954  ;;  %v1023_v7 = vsel %vm2077_vm6, %v1022_v38, %v1018_v14 }
 0x400   :  { %v1027_v17 = vrot.slane %v955_v4, %v1876_v50 }
 0x402   :  { %v1028_v18 = vsel %vm648_vm8, %v1027_v17, %v1023_v7 }
 0x403   :  { %v961_v15 = vpop.permute.xlu1 %960  ;;  %v1033_v40 = vsel %vm655_vm9, %v1032_v13, %v1028_v18 }
 0x404   :  { %v1037_v20 = vrot.slane %v961_v15, %v1892_v63 }
 0x406   :  { %v1038_v47 = vsel %vm662_vm1, %v1037_v20, %v1033_v40 }
 0x407   :  { %v1043_v50 = vsel %vm669_vm2, %v1042_v19, %v1038_v47 }
 0x408   :  { %1045 = vst [vmem:[#allocation4] sm:$0x1] %v1043_v50 }
 0x409   :  { %1514 = shalt.err (!%p1511_p12)
}
 0x40a   :  { %s1515_s2 = scalar_lea.hbm %s2069_s6, 16 }
 0x40b   :  { %p1516_p13 = scmp.ne.s32.totalorder %s2069_s6, %s1515_s2  ;;  %p1519_p0 = scmp.lt.u32.totalorder %s1515_s2, %s2069_s6 }
 0x40d   :  { %p1521_p1 = pnand %p1519_p0, %p1516_p13 }
 0x40f   :  { %1524 = shalt.err (!%p1521_p1)
}
 0x410   :  { %1067 = dma.vmem_to_hbm [thread:$0]  %s1065_s9, 16, %s2069_s6, [#allocation5]  }
 0x411   :  { %1525 = dma.done.wait [#allocation3], 16  }
 0x412   :  { %1526 = vsyncadd [#allocation3], 4294967280 }
 0x413   :  { %1527 = dma.done.wait [#allocation5], 16  }
 0x414   :  { %1528 = vsyncadd [#allocation5], 4294967280 }
 0x415   :  { %1076 = vsyncpa [#allocation3], 1 }
 0x416   :  { %1077 = vsyncpa [#allocation5], 1 }

</bundles_post_ra>
